<compile_context>
chip_gen: v7x
topology: tpu7x:2x2x1
jax: 0.10.0
libtpu: 0.0.40
codegen_flags: <defaults>
</compile_context>

<pallas_src>
import jax
import jax.numpy as jnp
from jax.experimental import pallas as pl
from jax.experimental.pallas import tpu as pltpu

_SUBLANE = 8  # sublane count of a vreg (f32)


def _round_up(v: int, m: int) -> int:
    return (v + m - 1) // m * m


def _mlp_kernel(x_ref, w1_ref, b1_ref, w2_ref, b2_ref, w3_ref, b3_ref, o_ref):
    # bf16 MXU operands, f32 accumulation; bias add / ReLU in f32 (v5e-safe).
    x = x_ref[...].astype(jnp.bfloat16)

    # Layer 1: Linear(in -> hidden) + ReLU.
    h = jnp.dot(x, w1_ref[...], preferred_element_type=jnp.float32)
    h = jnp.maximum(h + b1_ref[...], 0.0)        # (1, hidden) broadcasts over batch tile

    # Layer 2: Linear(hidden -> hidden) + ReLU.
    h = jnp.dot(h.astype(jnp.bfloat16), w2_ref[...], preferred_element_type=jnp.float32)
    h = jnp.maximum(h + b2_ref[...], 0.0)

    # Output layer: Linear(hidden -> out), no activation. Unpadded 16-wide store
    # (masked vst in VMEM is cheap vs 8x more HBM writeback bytes).
    y = jnp.dot(h.astype(jnp.bfloat16), w3_ref[...], preferred_element_type=jnp.float32)
    o_ref[...] = (y + b3_ref[...]).astype(o_ref.dtype)


def mlp_forward(x, w1, b1, w2, b2, w3, b3, *,
                block_b: int = 4096, min_pallas_batch: int = 256):
    """Fused 3-layer MLP, streamed over batch tiles.

    x: (B, d_in) float32.  Weights pre-transposed to (in, out); biases (1, out).
    """
    B, d_in = x.shape
    d_hid = w1.shape[1]
    d_out = w3.shape[1]

    # ---- Small-batch bypass: kernel launch + pipeline overhead dominates. ----
    if B < min_pallas_batch:
        h = jnp.maximum(x @ w1 + b1, 0.0)
        h = jnp.maximum(h @ w2 + b2, 0.0)
        return h @ w3 + b3

    # Convert the (VMEM-resident) weights to bf16 once; biases stay f32.
    w1b = w1.astype(jnp.bfloat16)
    w2b = w2.astype(jnp.bfloat16)
    w3b = w3.astype(jnp.bfloat16)

    # ---- Batch tile selection (multiple of 8 sublanes). ----
    #  * target ~8 grid steps at large B (>= ~2 pipelined steps per TC on v7x)
    #  * floor 512 rows so per-step DMA stays above the ~0.35 us step overhead
    #  * ceiling block_b rows to bound VMEM (incl. spilled f32 intermediates)
    steps_target = 8
    tile_floor = 512
    b_r = _round_up(B, _SUBLANE)
    tm = _round_up(pl.cdiv(B, steps_target), _SUBLANE)
    tm = max(tm, min(tile_floor, b_r))
    tm = min(tm, block_b, b_r)
    grid = (pl.cdiv(B, tm),)  # ragged final block handled by Pallas (no pad/slice)

    # Weights/biases: full-array blocks with constant index_map -> VMEM-resident.
    const = lambda a: pl.BlockSpec(a.shape, lambda i, _nd=a.ndim: (0,) * _nd)

    # Advisory cost hint for the surrounding XLA schedule (unpadded, exact).
    flops = 2 * B * (d_in * d_hid + d_hid * d_hid + d_hid * d_out)
    bytes_accessed = (
        4 * B * (d_in + d_out)                                    # streamed x + out (f32)
        + 2 * (d_in * d_hid + d_hid * d_hid + d_hid * d_out)      # resident bf16 weights
        + 4 * (2 * d_hid + d_out)                                 # f32 biases
    )

    return pl.pallas_call(
        _mlp_kernel,
        out_shape=jax.ShapeDtypeStruct((B, d_out), jnp.float32),
        grid=grid,
        in_specs=[
            pl.BlockSpec((tm, d_in), lambda i: (i, 0)),           # streamed x tiles
            const(w1b), const(b1),
            const(w2b), const(b2),
            const(w3b), const(b3),
        ],
        out_specs=pl.BlockSpec((tm, d_out), lambda i: (i, 0)),    # unpadded 16-wide out
        compiler_params=pltpu.CompilerParams(
            dimension_semantics=("parallel",),                    # shard batch over TCs (v7x)
            vmem_limit_bytes=32 * 1024 * 1024,                    # safe on v5e/v6e/v7x
        ),
        cost_estimate=pl.CostEstimate(
            flops=flops, transcendentals=0, bytes_accessed=bytes_accessed),
    )(x, w1b, b1, w2b, b2, w3b, b3)


def init_params(key, d_in, d_hidden, d_out):
    """Deterministic parameter init (uniform, like torch's default Kaiming-uniform range)."""
    ks = jax.random.split(key, 6)

    def linear(kw, kb, fan_in, fan_out):
        bound = 1.0 / jnp.sqrt(fan_in)
        # Stored as (in, out)  ==  PyTorch weight (out, in) transposed.
        w = jax.random.uniform(kw, (fan_in, fan_out), jnp.float32, -bound, bound)
        b = jax.random.uniform(kb, (1, fan_out), jnp.float32, -bound, bound)
        return w, b

    w1, b1 = linear(ks[0], ks[1], d_in, d_hidden)
    w2, b2 = linear(ks[2], ks[3], d_hidden, d_hidden)
    w3, b3 = linear(ks[4], ks[5], d_hidden, d_out)
    return w1, b1, w2, b2, w3, b3


def mlp_reference_f32(x, w1, b1, w2, b2, w3, b3):
    h = jnp.maximum(x @ w1 + b1, 0.0)
    h = jnp.maximum(h @ w2 + b2, 0.0)
    return h @ w3 + b3


def mlp_reference_bf16(x, w1, b1, w2, b2, w3, b3):
    """Matches the kernel's numerics: bf16 MXU operands, f32 accumulation."""
    bf = jnp.bfloat16
    h = jnp.dot(x.astype(bf), w1.astype(bf), preferred_element_type=jnp.float32)
    h = jnp.maximum(h + b1, 0.0)
    h = jnp.dot(h.astype(bf), w2.astype(bf), preferred_element_type=jnp.float32)
    h = jnp.maximum(h + b2, 0.0)
    y = jnp.dot(h.astype(bf), w3.astype(bf), preferred_element_type=jnp.float32)
    return y + b3


if __name__ == "__main__":
    D_IN, D_HID, D_OUT = 32, 64, 16

    key = jax.random.PRNGKey(0)
    kx, kp, kx2 = jax.random.split(key, 3)
    params = init_params(kp, D_IN, D_HID, D_OUT)

    # (1) Typical tiny batch -> small-batch bypass (pure-jnp path, exact f32 semantics).
    x_small = jax.random.normal(kx, (4, D_IN), dtype=jnp.float32)
    out_small = jax.block_until_ready(mlp_forward(x_small, *params))
    ref_small = mlp_reference_f32(x_small, *params)
    assert out_small.shape == (4, D_OUT)
    assert jnp.allclose(out_small, ref_small, atol=1e-5, rtol=1e-5), "mismatch (bypass)"

    # (2) Same tiny batch forced through the Pallas kernel (single ragged block).
    out_small_k = jax.block_until_ready(
        mlp_forward(x_small, *params, min_pallas_batch=0))
    ref_small_k = mlp_reference_bf16(x_small, *params)
    assert out_small_k.shape == (4, D_OUT)
    assert jnp.allclose(out_small_k, ref_small_k, atol=1e-3, rtol=1e-3), \
        "mismatch (kernel, small batch)"

    # (3) Larger, non-multiple batch -> batch-tiled Pallas path with a partial
    #     final block (no wrapper-side padding or slicing).
    x_big = jax.random.normal(kx2, (1000, D_IN), dtype=jnp.float32)
    out_big = jax.block_until_ready(mlp_forward(x_big, *params))
    ref_big = mlp_reference_bf16(x_big, *params)
    assert out_big.shape == (1000, D_OUT)
    assert jnp.allclose(out_big, ref_big, atol=1e-3, rtol=1e-3), "mismatch (tiled batch)"

    print("KERNEL_OK")
</pallas_src>

<mosaic_0001>
module attributes {stable_mosaic.version = 11 : i64} {
  func.func @_mlp_kernel(%arg0: i32, %arg1: memref<8x32xf32, #tpu.memory_space<vmem>>, %arg2: memref<32x64xbf16, #tpu.memory_space<vmem>>, %arg3: memref<1x64xf32, #tpu.memory_space<vmem>>, %arg4: memref<64x64xbf16, #tpu.memory_space<vmem>>, %arg5: memref<1x64xf32, #tpu.memory_space<vmem>>, %arg6: memref<64x16xbf16, #tpu.memory_space<vmem>>, %arg7: memref<1x16xf32, #tpu.memory_space<vmem>>, %arg8: memref<8x16xf32, #tpu.memory_space<vmem>>) attributes {dimension_semantics = [#tpu.dimension_semantics<parallel>], iteration_bounds = array<i64: 1>, scalar_prefetch = 0 : i64, scratch_operands = 0 : i64, tpu.core_type = #tpu.core_type<tc>, window_params = [{transform_indices = @transform_0, window_bounds = array<i64: 8, 32>}, {pipeline_mode = #tpu.pipeline_mode<synchronous>, transform_indices = @transform_1, window_bounds = array<i64: 32, 64>}, {pipeline_mode = #tpu.pipeline_mode<synchronous>, transform_indices = @transform_2, window_bounds = array<i64: 1, 64>}, {pipeline_mode = #tpu.pipeline_mode<synchronous>, transform_indices = @transform_3, window_bounds = array<i64: 64, 64>}, {pipeline_mode = #tpu.pipeline_mode<synchronous>, transform_indices = @transform_4, window_bounds = array<i64: 1, 64>}, {pipeline_mode = #tpu.pipeline_mode<synchronous>, transform_indices = @transform_5, window_bounds = array<i64: 64, 16>}, {pipeline_mode = #tpu.pipeline_mode<synchronous>, transform_indices = @transform_6, window_bounds = array<i64: 1, 16>}, {transform_indices = @transform_7, window_bounds = array<i64: 8, 16>}]} {
    %c0 = arith.constant 0 : index
    %c0_0 = arith.constant 0 : index
    %0 = vector.load %arg1[%c0, %c0_0] : memref<8x32xf32, #tpu.memory_space<vmem>>, vector<8x32xf32>
    %1 = arith.truncf %0 : vector<8x32xf32> to vector<8x32xbf16>
    %c0_1 = arith.constant 0 : index
    %c0_2 = arith.constant 0 : index
    %2 = vector.load %arg2[%c0_1, %c0_2] : memref<32x64xbf16, #tpu.memory_space<vmem>>, vector<32x64xbf16>
    %cst = arith.constant dense<0.000000e+00> : vector<8x64xf32>
    %3 = tpu.matmul %1, %2, %cst {dimension_numbers = #tpu.dot_dimension_numbers<[1], [0], [0], [1], [0, 0, 1, 1], [], []>} : vector<8x32xbf16>, vector<32x64xbf16>, vector<8x64xf32> -> vector<8x64xf32>
    %c0_3 = arith.constant 0 : index
    %c0_4 = arith.constant 0 : index
    %4 = vector.load %arg3[%c0_3, %c0_4] : memref<1x64xf32, #tpu.memory_space<vmem>>, vector<1x64xf32>
    %5 = vector.broadcast %4 : vector<1x64xf32> to vector<8x64xf32>
    %6 = arith.addf %3, %5 : vector<8x64xf32>
    %cst_5 = arith.constant 0.000000e+00 : f32
    %7 = vector.broadcast %cst_5 : f32 to vector<8x64xf32>
    %8 = arith.maximumf %6, %7 : vector<8x64xf32>
    %9 = arith.truncf %8 : vector<8x64xf32> to vector<8x64xbf16>
    %c0_6 = arith.constant 0 : index
    %c0_7 = arith.constant 0 : index
    %10 = vector.load %arg4[%c0_6, %c0_7] : memref<64x64xbf16, #tpu.memory_space<vmem>>, vector<64x64xbf16>
    %cst_8 = arith.constant dense<0.000000e+00> : vector<8x64xf32>
    %11 = tpu.matmul %9, %10, %cst_8 {dimension_numbers = #tpu.dot_dimension_numbers<[1], [0], [0], [1], [0, 0, 1, 1], [], []>} : vector<8x64xbf16>, vector<64x64xbf16>, vector<8x64xf32> -> vector<8x64xf32>
    %c0_9 = arith.constant 0 : index
    %c0_10 = arith.constant 0 : index
    %12 = vector.load %arg5[%c0_9, %c0_10] : memref<1x64xf32, #tpu.memory_space<vmem>>, vector<1x64xf32>
    %13 = vector.broadcast %12 : vector<1x64xf32> to vector<8x64xf32>
    %14 = arith.addf %11, %13 : vector<8x64xf32>
    %cst_11 = arith.constant 0.000000e+00 : f32
    %15 = vector.broadcast %cst_11 : f32 to vector<8x64xf32>
    %16 = arith.maximumf %14, %15 : vector<8x64xf32>
    %17 = arith.truncf %16 : vector<8x64xf32> to vector<8x64xbf16>
    %c0_12 = arith.constant 0 : index
    %c0_13 = arith.constant 0 : index
    %18 = vector.load %arg6[%c0_12, %c0_13] : memref<64x16xbf16, #tpu.memory_space<vmem>>, vector<64x16xbf16>
    %cst_14 = arith.constant dense<0.000000e+00> : vector<8x16xf32>
    %19 = tpu.matmul %17, %18, %cst_14 {dimension_numbers = #tpu.dot_dimension_numbers<[1], [0], [0], [1], [0, 0, 1, 1], [], []>} : vector<8x64xbf16>, vector<64x16xbf16>, vector<8x16xf32> -> vector<8x16xf32>
    %c0_15 = arith.constant 0 : index
    %c0_16 = arith.constant 0 : index
    %20 = vector.load %arg7[%c0_15, %c0_16] : memref<1x16xf32, #tpu.memory_space<vmem>>, vector<1x16xf32>
    %21 = vector.broadcast %20 : vector<1x16xf32> to vector<8x16xf32>
    %22 = arith.addf %19, %21 : vector<8x16xf32>
    %c0_17 = arith.constant 0 : index
    %c0_18 = arith.constant 0 : index
    %23 = vector.load %arg8[%c0_17, %c0_18] : memref<8x16xf32, #tpu.memory_space<vmem>>, vector<8x16xf32>
    tpu.vector_store %arg8[%c0_17, %c0_18], %22 {strides = array<i32>} : memref<8x16xf32, #tpu.memory_space<vmem>>, vector<8x16xf32>,
    return
  }
  func.func @transform_0(%arg0: i32) -> (i32, i32) {
    %c0_i32 = arith.constant 0 : i32
    %c0_i32_0 = arith.constant 0 : i32
    return %arg0, %c0_i32 : i32, i32
  }
  func.func @transform_1(%arg0: i32) -> (i32, i32) {
    %c0_i32 = arith.constant 0 : i32
    %c0_i32_0 = arith.constant 0 : i32
    %c0_i32_1 = arith.constant 0 : i32
    return %c0_i32, %c0_i32_0 : i32, i32
  }
  func.func @transform_2(%arg0: i32) -> (i32, i32) {
    %c0_i32 = arith.constant 0 : i32
    %c0_i32_0 = arith.constant 0 : i32
    %c0_i32_1 = arith.constant 0 : i32
    return %c0_i32, %c0_i32_0 : i32, i32
  }
  func.func @transform_3(%arg0: i32) -> (i32, i32) {
    %c0_i32 = arith.constant 0 : i32
    %c0_i32_0 = arith.constant 0 : i32
    %c0_i32_1 = arith.constant 0 : i32
    return %c0_i32, %c0_i32_0 : i32, i32
  }
  func.func @transform_4(%arg0: i32) -> (i32, i32) {
    %c0_i32 = arith.constant 0 : i32
    %c0_i32_0 = arith.constant 0 : i32
    %c0_i32_1 = arith.constant 0 : i32
    return %c0_i32, %c0_i32_0 : i32, i32
  }
  func.func @transform_5(%arg0: i32) -> (i32, i32) {
    %c0_i32 = arith.constant 0 : i32
    %c0_i32_0 = arith.constant 0 : i32
    %c0_i32_1 = arith.constant 0 : i32
    return %c0_i32, %c0_i32_0 : i32, i32
  }
  func.func @transform_6(%arg0: i32) -> (i32, i32) {
    %c0_i32 = arith.constant 0 : i32
    %c0_i32_0 = arith.constant 0 : i32
    %c0_i32_1 = arith.constant 0 : i32
    return %c0_i32, %c0_i32_0 : i32, i32
  }
  func.func @transform_7(%arg0: i32) -> (i32, i32) {
    %c0_i32 = arith.constant 0 : i32
    %c0_i32_0 = arith.constant 0 : i32
    return %arg0, %c0_i32 : i32, i32
  }
}

</mosaic_0001>

<bundles_post_ra>
// kernel: tpu_custom_call.1
= control target key start
LH: loop header
LB: loop body
LE: loop exit
PB: predicated region body
PF: predicated region fallthrough
CT: control target
= control target key end

     0   :  { %12 = vsyncpa [#allocation3], 0  ;;  %s544_s0 = inlined_call_operand.hbm [shape: f32[4,32], index: 0, kind: input, shape index: {}]   ;;  %s545_s1 = inlined_call_operand.vmem [shape: bf16[32,64], index: 1, kind: input, shape index: {}]   ;;  %s546_s2 = inlined_call_operand.vmem [shape: f32[1,64], index: 2, kind: input, shape index: {}]   ;;  %s547_s3 = inlined_call_operand.vmem [shape: bf16[64,64], index: 3, kind: input, shape index: {}]   ;;  %s548_s4 = inlined_call_operand.vmem [shape: f32[1,64], index: 4, kind: input, shape index: {}]   ;;  %s549_s5 = inlined_call_operand.vmem [shape: bf16[64,16], index: 5, kind: input, shape index: {}]   ;;  %s550_s6 = inlined_call_operand.vmem [shape: f32[1,16], index: 6, kind: input, shape index: {}]   ;;  %s551_s7 = inlined_call_operand.hbm [shape: f32[4,16], index: 7, kind: output, shape index: {}]  }
   0x1   :  { %13 = vsyncpa [#allocation4], 0 }
   0x2   :  { %18 = vsyncadd [#allocation3], 64  ;;  %s424_s24 = smov [#allocation2]   ;;  %s376_s28 = scalar_lea.hbm %s544_s0, 64 }
   0x3   :  { %s19_s25 = sshll.u32 %s424_s24, 4  ;;  %p377_p0 = scmp.ne.s32.totalorder %s544_s0, %s376_s28  ;;  %s20_s25 = int_to_ptr.vmem [resolvable:$true] %s19_s25 }
   0x4   :  { %p380_p1 = scmp.lt.u32.totalorder %s376_s28, %s544_s0 }
   0x6   :  { %p382_p2 = pnand %p380_p1, %p377_p0 }
   0x8   :  { %385 = shalt.err (!%p382_p2)
}
   0x9   :  { %s386_s10 = scalar_lea.vmem %s20_s25, 64  ;;  %s390_s11 = scalar_lea.vmem %s20_s25, 128 }
   0xa   :  { %p387_p3 = scmp.ne.s32.totalorder %s20_s25, %s386_s10  ;;  %p391_p4 = scmp.lt.s32.totalorder %s20_s25, %s20_s25 }
   0xb   :  { %p392_p5 = scmp.lt.s32.totalorder %s390_s11, %s386_s10 }
   0xd   :  { %p393_p6 = por %p392_p5, %p391_p4 }
   0xf   :  { %p394_p7 = pnand %p393_p6, %p387_p3 }
  0x11   :  { %397 = shalt.err (!%p394_p7)
}
  0x12   :  { %s425_s12 = smov 64   ;;  %s426_s13 = smov 4  }
  0x13   :  { %25 = dma.hbm_to_vmem [thread:$0]  %s544_s0, 64, %s20_s25, [#allocation3], %s425_s12, %s425_s12, %s426_s13  }
  0x14   :  { %420 = dma.done.wait [#allocation3], 128  }
  0x15   :  { %421 = vsyncadd [#allocation3], 4294967168  ;;  %v427_v0 = vmov 0.0   ;;  %vm428_vm0 = vmmov 0   ;;  %v366_v1 = vld [vmem:[%s545_s1] sm:$0xff]   ;;  %v367_v2 = vld [vmem:[%s545_s1 + $0x8] sm:$0xff]  }
  0x16   :  { %328 = vmatprep.subr.bf16.mxu0 %v427_v0  ;;  %332 = vmatprep.mubr.msk.bf16.mxu0 %vm428_vm0, %v427_v0  ;;  %v42_v3 = vld [vmem:[#allocation2] sm:$0xff]  ;;  %vm67_vm1 = vcmask 261120   ;;  %v369_v5 = vld [vmem:[%s547_s3 + $0x8] sm:$0xff]   ;;  %v370_v7 = vld [vmem:[%s547_s3 + $0x10] sm:$0xff]   ;;  %vm152_vm2 = vcmask 523264   ;;  %vm280_vm3 = vcmask 130048  }
  0x17   :  { %336 = vmatprep.subr.bf16.mxu1 %v427_v0  ;;  %344 = vmatprep.mubr.msk.bf16.mxu1 %vm428_vm0, %v427_v0  ;;  %v368_v4 = vld [vmem:[%s547_s3] sm:$0xff]   ;;  %v43_v6 = vpack.c.bf16 %v42_v3, %v42_v3  ;;  %v371_v8 = vld [vmem:[%s547_s3 + $0x18] sm:$0xff]   ;;  %v373_v10 = vld [vmem:[%s549_s5 + $0x8] sm:$0xff]  }
  0x18   :  { %329 = vmatpush3.bf16.msra.mxu0 %v366_v1  ;;  %337 = vmatpush3.bf16.msra.mxu1 %v368_v4  ;;  %v372_v9 = vld [vmem:[%s549_s5] sm:$0xff]   ;;  %v374_v19 = vld [vmem:[%s549_s5 + $0x10] sm:$0xff]   ;;  %v375_v20 = vld [vmem:[%s549_s5 + $0x18] sm:$0xff]  }
  0x19   :  { %330 = vmatprep.subr.bf16.mxu0 %v427_v0  ;;  %338 = vmatprep.subr.bf16.mxu1 %v427_v0  ;;  %v299_v11 = vld [vmem:[%s546_s2] ss:$0 sm:$0xff] }
  0x1a   :  { %v303_v21 = vld [vmem:[%s548_s4] ss:$0 sm:$0xff] }
  0x1b   :  { %v309_v29 = vld [vmem:[%s550_s6] ss:$0 sm:$0xff] }
  0x1c   :  { %331 = vmatpush3.bf16.msra.mxu0 %v367_v2  ;;  %339 = vmatpush3.bf16.msra.mxu1 %v369_v5 }
  0x1d   :  { %348 = vmatprep.subr.bf16.mxu0 %v427_v0  ;;  %340 = vmatprep.subr.bf16.mxu1 %v427_v0 }
  0x1f   :  { %333 = vmatmul.mubr.msk.bf16.vlgmr.msra.gmra.mrb[0].mxu0 %vm67_vm1, %v43_v6 }
  0x20   :  { %356 = vmatprep.mubr.msk.bf16.mxu0 %vm428_vm0, %v427_v0  ;;  %341 = vmatpush3.bf16.msra.mxu1 %v370_v7 }
  0x21   :  { %342 = vmatprep.subr.bf16.mxu1 %v427_v0  ;;  %349 = vmatpush3.bf16.msra.mxu0 %v372_v9 }
  0x22   :  { %350 = vmatprep.subr.bf16.mxu0 %v427_v0 }
  0x24   :  { %343 = vmatpush3.bf16.msra.mxu1 %v371_v8 }
  0x25   :  { %351 = vmatpush3.bf16.msra.mxu0 %v373_v10 }
  0x26   :  { %352 = vmatprep.subr.bf16.mxu0 %v427_v0 }
  0x29   :  { %353 = vmatpush3.bf16.msra.mxu0 %v374_v19 }
  0x2a   :  { %354 = vmatprep.subr.bf16.mxu0 %v427_v0 }
  0x2d   :  { %355 = vmatpush3.bf16.msra.mxu0 %v375_v20 }
  0xf2   :  { %v105_v12 = vpop.f32.mrb[0].mxu0 }
  0xf3   :  { %v106_v13 = vadd.f32 %v299_v11, %v105_v12  ;;  %v334_v14 = vpop.f32.mrb[1].mxu0 }
  0xf4   :  { %v108_v15 = vpop.f32.mrb[2].mxu0 }
  0xf5   :  { %v111_v16 = vmax.f32 %v106_v13, 0.0  ;;  %v335_v17 = vpop.f32.mrb[3].mxu0 }
  0xf7   :  { %v112_v18 = vpack.c.bf16 %v111_v16, %v111_v16 }
  0xf9   :  { %345 = vmatmul.mubr.msk.bf16.vlgmr.msra.gmra.mrb[0].mxu1 %vm152_vm2, %v112_v18 }
 0x1cc   :  { %v190_v22 = vpop.f32.mrb[0].mxu1 }
 0x1cd   :  { %v191_v23 = vadd.f32 %v303_v21, %v190_v22  ;;  %v346_v24 = vpop.f32.mrb[1].mxu1 }
 0x1ce   :  { %v193_v25 = vpop.f32.mrb[2].mxu1 }
 0x1cf   :  { %v196_v26 = vmax.f32 %v191_v23, 0.0  ;;  %v347_v27 = vpop.f32.mrb[3].mxu1 }
 0x1d1   :  { %v197_v28 = vpack.c.bf16 %v196_v26, %v196_v26 }
 0x1d3   :  { %357 = vmatmul.mubr.msk.bf16.vlgmr.msra.gmra.mrb[4].mxu0 %vm152_vm2, %v197_v28 }
 0x2a6   :  { %v274_v30 = vpop.f32.mrb[4].mxu0 }
 0x2a7   :  { %v275_v31 = vadd.f32 %v309_v29, %v274_v30  ;;  %v358_v32 = vpop.f32.mrb[5].mxu0 }
 0x2a8   :  { %v277_v33 = vpop.f32.mrb[6].mxu0 }
 0x2a9   :  { %281 = vst.msk [vmem:[#allocation5] sm:$0xff] %vm280_vm3, %v275_v31  ;;  %v359_v34 = vpop.f32.mrb[7].mxu0 }
 0x2aa   :  { %286 = vsyncadd [#allocation4], 64  ;;  %s429_s4 = smov [#allocation5]  }
 0x2ab   :  { %s287_s5 = sshll.u32 %s429_s4, 4  ;;  %s288_s5 = int_to_ptr.vmem [resolvable:$true] %s287_s5 }
 0x2ac   :  { %s398_s17 = scalar_lea.vmem %s288_s5, 64  ;;  %s402_s18 = scalar_lea.vmem %s288_s5, 128 }
 0x2ad   :  { %p399_p8 = scmp.ne.s32.totalorder %s288_s5, %s398_s17  ;;  %p403_p9 = scmp.lt.s32.totalorder %s288_s5, %s288_s5 }
 0x2ae   :  { %p404_p10 = scmp.lt.s32.totalorder %s402_s18, %s398_s17 }
 0x2b0   :  { %p405_p11 = por %p404_p10, %p403_p9 }
 0x2b2   :  { %p406_p12 = pnand %p405_p11, %p399_p8 }
 0x2b4   :  { %409 = shalt.err (!%p406_p12)
}
 0x2b5   :  { %s410_s0 = scalar_lea.hbm %s551_s7, 64 }
 0x2b6   :  { %p411_p13 = scmp.ne.s32.totalorder %s551_s7, %s410_s0  ;;  %p414_p0 = scmp.lt.u32.totalorder %s410_s0, %s551_s7 }
 0x2b8   :  { %p416_p1 = pnand %p414_p0, %p411_p13 }
 0x2ba   :  { %419 = shalt.err (!%p416_p1)
}
 0x2bb   :  { %293 = dma.vmem_to_hbm [thread:$0]  %s288_s5, 64, %s551_s7, [#allocation4], %s425_s12, %s425_s12, %s426_s13  }
 0x2bc   :  { %422 = dma.done.wait [#allocation4], 128  }
 0x2bd   :  { %423 = vsyncadd [#allocation4], 4294967168 }
 0x2be   :  { %297 = vsyncpa [#allocation3], 1 }
 0x2bf   :  { %298 = vsyncpa [#allocation4], 1 }

</bundles_post_ra>
